<compile_context>
chip_gen: v6e
topology: v6e:2x2x1
jax: 0.10.0
libtpu: 0.0.40
codegen_flags: <defaults>
</compile_context>

<pallas_src>
import math

import jax
import jax.numpy as jnp
from jax.experimental import pallas as pl
from jax.experimental.pallas import tpu as pltpu


# ---------------------------------------------------------------------------
# kernels
# ---------------------------------------------------------------------------
def _drop_path_kernel(scale_ref, x_ref, o_ref):
    # scale_ref: (tile_r, 1) f32 per-row scale (0.0 or 1/keep_prob)
    # x_ref/o_ref: (tile_r, C) contiguous feature slab
    o_ref[...] = (x_ref[...] * scale_ref[...]).astype(o_ref.dtype)


def _drop_path_add_kernel(scale_ref, x_ref, res_ref, o_ref):
    # fused residual add: out = residual + x * scale
    o_ref[...] = (res_ref[...] + x_ref[...] * scale_ref[...]).astype(o_ref.dtype)


# ---------------------------------------------------------------------------
# helpers
# ---------------------------------------------------------------------------
def _cdiv(a, b):
    return -(-a // b)


def _round_up(v, m):
    return ((v + m - 1) // m) * m


def _round_down_mult(v, m):
    return (v // m) * m


def _sublanes(dtype) -> int:
    # 8 rows per vreg for 4-byte dtypes, 16 for 2-byte, 32 for 1-byte.
    return max(8, 32 // jnp.dtype(dtype).itemsize)


def _pick_row_width(f_pad: int, max_lanes: int) -> int:
    """Largest divisor of f_pad that is a multiple of 128 and <= max_lanes.

    f_pad is already a multiple of 128, so 128 itself always qualifies."""
    m = f_pad // 128
    d_max = max(1, min(m, max_lanes // 128))
    for d in range(d_max, 0, -1):
        if m % d == 0:
            return 128 * d
    return 128


# ---------------------------------------------------------------------------
# wrapper
# ---------------------------------------------------------------------------
def drop_path_pallas(
    x,
    drop_prob: float = 0.0,
    training: bool = False,
    *,
    key=None,
    residual=None,
    donate_x: bool = False,
):
    """DropPath / stochastic depth. x: (B, ...) array of any rank >= 1.

    If `residual` is given, returns residual + drop_path(x) fused in one kernel
    (one fewer HBM round trip for the standard residual-block pattern).
    """
    if drop_prob == 0.0 or not training:
        return x if residual is None else x + residual
    if key is None:
        raise ValueError(
            "drop_path_pallas: a PRNG `key` is required when training=True and drop_prob > 0."
        )

    keep_prob = 1.0 - drop_prob
    b = x.shape[0]
    f = int(math.prod(x.shape[1:])) if x.ndim > 1 else 1
    itemsize = jnp.dtype(x.dtype).itemsize
    sub = _sublanes(x.dtype)

    fused = residual is not None
    if fused:
        assert residual.shape == x.shape, "residual must match x's shape"
        residual = residual.astype(x.dtype)

    # --- per-sample scale, computed once in f32 (exact mask even for bf16 x) ---
    rand = jax.random.uniform(key, (b,), dtype=jnp.float32)
    scale = jnp.floor(keep_prob + rand) * (1.0 / keep_prob)  # (B,) in {0, 1/keep_prob}

    # --- generation-aware block-size budget ---------------------------------
    # v7x has 64 MiB VMEM per TC (v5e/v6e: 128 MiB).  Stay conservative in case
    # get_tpu_info reports the per-chip total on v7x: footprint is kept well
    # under half of the reported capacity.
    try:
        vmem_cap = int(pltpu.get_tpu_info().vmem_capacity_bytes)
    except Exception:
        vmem_cap = 64 * 1024 * 1024  # conservative per-TC fallback
    n_big_bufs = (3 if fused else 2) * 2  # double-buffered x, out (+ residual)
    target_blk = min(8 << 20, max(512 << 10, vmem_cap // (4 * n_big_bufs)))

    # --- layout: (B, F) -> pad F to a multiple of 128 -> (R, C) -------------
    # Full-width row tiles of the (R, C) view are contiguous HBM slabs and
    # lane-dense on store; C | F_pad so every row belongs to exactly one sample.
    f_pad = _round_up(max(f, 1), 128)
    max_lanes = max(128, target_blk // (sub * itemsize))
    c = _pick_row_width(f_pad, max_lanes)
    rows_per_sample = f_pad // c
    r = b * rows_per_sample

    x2 = x.reshape(b, f)
    if f_pad != f:
        # TODO(synk): the pad costs one extra HBM pass; only hit when
        # prod(x.shape[1:]) is not a multiple of 128.
        x2 = jnp.pad(x2, ((0, 0), (0, f_pad - f)))
    x2 = x2.reshape(r, c)

    if fused:
        res2 = residual.reshape(b, f)
        if f_pad != f:
            res2 = jnp.pad(res2, ((0, 0), (0, f_pad - f)))
        res2 = res2.reshape(r, c)

    scale_rows = jnp.repeat(scale, rows_per_sample).reshape(r, 1)  # (R, 1) f32

    # --- row-tile selection --------------------------------------------------
    # Large (~1-8 MiB) contiguous blocks; prefer >= 4 grid steps (pipelining on
    # every generation, megacore sharding on v7x) as long as blocks stay
    # >= ~256 KiB.  A ragged last tile (r % tile_r != 0) is handled by Pallas
    # with a masked store on that single tile only.
    row_bytes = c * itemsize
    tile_r = max(sub, _round_down_mult(target_blk // row_bytes, sub))
    tile_r = min(tile_r, r)
    steps = _cdiv(r, tile_r)
    if steps < 4:
        t4 = _round_down_mult(r // 4, sub)
        if t4 >= sub and t4 * row_bytes >= (256 << 10):
            tile_r = t4
            steps = _cdiv(r, tile_r)
    grid = (steps,)

    # --- VMEM accounting ------------------------------------------------------
    blk_bytes = tile_r * c * itemsize
    scale_blk_bytes = _round_up(max(tile_r, 8), 8) * 128 * 4  # lane-padded f32
    n_blk = 3 if fused else 2
    vmem_needed = 2 * (n_blk * blk_bytes + scale_blk_bytes) + (2 << 20)
    vmem_limit = int(min(0.9 * vmem_cap, max(vmem_needed, 16 << 20)))

    # --- pallas_call ----------------------------------------------------------
    in_specs = [
        pl.BlockSpec((tile_r, 1), lambda i: (i, 0)),  # per-row scale (tiny DMA)
        pl.BlockSpec((tile_r, c), lambda i: (i, 0)),  # x row slab (contiguous)
    ]
    operands = [scale_rows, x2]
    kernel = _drop_path_kernel
    if fused:
        in_specs.append(pl.BlockSpec((tile_r, c), lambda i: (i, 0)))  # residual slab
        operands.append(res2)
        kernel = _drop_path_add_kernel

    # TODO(synk): for very large activations / high drop_prob, a manual-DMA
    # (memory_space=pl.ANY) variant could skip reading x for fully-dropped row
    # slabs; not worth the complexity at these sizes.
    out2 = pl.pallas_call(
        kernel,
        out_shape=jax.ShapeDtypeStruct((r, c), x.dtype),
        grid_spec=pltpu.PrefetchScalarGridSpec(
            num_scalar_prefetch=0,
            grid=grid,
            in_specs=in_specs,
            out_specs=pl.BlockSpec((tile_r, c), lambda i: (i, 0)),
        ),
        compiler_params=pltpu.CompilerParams(
            dimension_semantics=("parallel",),
            vmem_limit_bytes=vmem_limit,
        ),
        input_output_aliases={1: 0} if donate_x else {},
    )(*operands)

    out = out2.reshape(b, f_pad)
    if f_pad != f:
        out = out[:, :f]
    return out.reshape(x.shape)


# ---------------------------------------------------------------------------
# demo / checks
# ---------------------------------------------------------------------------
if __name__ == "__main__":
    key = jax.random.PRNGKey(0)
    kx, kd, kr = jax.random.split(key, 3)

    drop_prob = 0.25
    keep_prob = 1.0 - drop_prob

    # Small NCHW input, consistent with typical DropPath usage in HAT blocks.
    x = jax.random.normal(kx, (2, 4, 16, 16), dtype=jnp.float32)

    # Reference mask/scale (same key / same draws as the kernel wrapper).
    rand = jax.random.uniform(kd, (x.shape[0],), dtype=jnp.float32)
    mask = jnp.floor(keep_prob + rand).reshape(2, 1, 1, 1)
    y_ref = x / keep_prob * mask

    # 1) Training path (kernel does the work).
    y_train = jax.block_until_ready(
        drop_path_pallas(x, drop_prob=drop_prob, training=True, key=kd)
    )
    assert jnp.allclose(y_train, y_ref, atol=1e-6), "train-path mismatch vs reference"

    # 2) Fused residual path: out = residual + drop_path(x).
    res = jax.random.normal(kr, x.shape, dtype=jnp.float32)
    y_fused = jax.block_until_ready(
        jax.jit(
            lambda xx, rr, kk: drop_path_pallas(
                xx, drop_prob=drop_prob, training=True, key=kk, residual=rr
            )
        )(x, res, kd)
    )
    assert jnp.allclose(y_fused, res + y_ref, atol=1e-5), "fused-path mismatch vs reference"

    # 3) bf16 input: mask/scale math stays in f32, only the final store is bf16.
    xb = x.astype(jnp.bfloat16)
    yb = jax.block_until_ready(
        drop_path_pallas(xb, drop_prob=drop_prob, training=True, key=kd)
    )
    y_ref_b = xb.astype(jnp.float32) / keep_prob * mask
    assert jnp.allclose(yb.astype(jnp.float32), y_ref_b, atol=1e-2, rtol=1e-2), (
        "bf16-path mismatch vs reference"
    )

    # 4) Non-multiple-of-128 feature count (exercises the pad path).
    xo = jax.random.normal(kx, (2, 3, 15, 15), dtype=jnp.float32)
    yo = jax.block_until_ready(
        drop_path_pallas(xo, drop_prob=drop_prob, training=True, key=kd)
    )
    yo_ref = xo / keep_prob * jnp.floor(keep_prob + rand).reshape(2, 1, 1, 1)
    assert jnp.allclose(yo, yo_ref, atol=1e-6), "odd-F path mismatch vs reference"

    # 5) Donated / aliased path: x must also be donated at the jit boundary for
    #    the aliasing to actually avoid the defensive copy.
    donate_fn = jax.jit(
        lambda xx, kk: drop_path_pallas(
            xx, drop_prob=drop_prob, training=True, key=kk, donate_x=True
        ),
        donate_argnums=(0,),
    )
    x_copy = x + 0.0  # fresh buffer so the original x stays valid
    y_alias = jax.block_until_ready(donate_fn(x_copy, kd))
    assert jnp.allclose(y_alias, y_ref, atol=1e-6), "aliased-path mismatch vs reference"

    # 6) Eval path (identity).
    y_eval = jax.block_until_ready(
        drop_path_pallas(x, drop_prob=drop_prob, training=False)
    )
    assert jnp.array_equal(y_eval, x)

    print("KERNEL_OK")
</pallas_src>

<mosaic_0001>
module attributes {stable_mosaic.version = 11 : i64} {
  func.func @_drop_path_kernel(%arg0: i32, %arg1: memref<2x1xf32, #tpu.memory_space<vmem>>, %arg2: memref<2x1024xf32, #tpu.memory_space<vmem>>, %arg3: memref<2x1024xf32, #tpu.memory_space<vmem>>) attributes {dimension_semantics = [#tpu.dimension_semantics<parallel>], iteration_bounds = array<i64: 1>, scalar_prefetch = 0 : i64, scratch_operands = 0 : i64, tpu.core_type = #tpu.core_type<tc>, window_params = [{transform_indices = @transform_0, window_bounds = array<i64: 2, 1>}, {transform_indices = @transform_1, window_bounds = array<i64: 2, 1024>}, {transform_indices = @transform_2, window_bounds = array<i64: 2, 1024>}]} {
    %c0 = arith.constant 0 : index
    %c0_0 = arith.constant 0 : index
    %0 = vector.load %arg2[%c0, %c0_0] : memref<2x1024xf32, #tpu.memory_space<vmem>>, vector<2x1024xf32>
    %c0_1 = arith.constant 0 : index
    %c0_2 = arith.constant 0 : index
    %1 = vector.load %arg1[%c0_1, %c0_2] : memref<2x1xf32, #tpu.memory_space<vmem>>, vector<2x1xf32>
    %2 = vector.broadcast %1 : vector<2x1xf32> to vector<2x1024xf32>
    %3 = arith.mulf %0, %2 : vector<2x1024xf32>
    %c0_3 = arith.constant 0 : index
    %c0_4 = arith.constant 0 : index
    %4 = vector.load %arg3[%c0_3, %c0_4] : memref<2x1024xf32, #tpu.memory_space<vmem>>, vector<2x1024xf32>
    tpu.vector_store %arg3[%c0_3, %c0_4], %3 {strides = array<i32>} : memref<2x1024xf32, #tpu.memory_space<vmem>>, vector<2x1024xf32>,
    return
  }
  func.func @transform_0(%arg0: i32) -> (i32, i32) {
    %c0_i32 = arith.constant 0 : i32
    %c0_i32_0 = arith.constant 0 : i32
    return %arg0, %c0_i32 : i32, i32
  }
  func.func @transform_1(%arg0: i32) -> (i32, i32) {
    %c0_i32 = arith.constant 0 : i32
    %c0_i32_0 = arith.constant 0 : i32
    return %arg0, %c0_i32 : i32, i32
  }
  func.func @transform_2(%arg0: i32) -> (i32, i32) {
    %c0_i32 = arith.constant 0 : i32
    %c0_i32_0 = arith.constant 0 : i32
    return %arg0, %c0_i32 : i32, i32
  }
}

</mosaic_0001>

<bundles_post_ra>
// kernel: tpu_custom_call.1
= control target key start
LH: loop header
LB: loop body
LE: loop exit
PB: predicated region body
PF: predicated region fallthrough
CT: control target
= control target key end

     0   :  { %7 = vsyncpa [#allocation3], 0  ;;  %s135_s0 = inlined_call_operand.vmem [shape: f32[2,1], index: 0, kind: input, shape index: {}]   ;;  %s136_s1 = inlined_call_operand.hbm [shape: f32[2,1024], index: 1, kind: input, shape index: {}]   ;;  %s137_s2 = inlined_call_operand.hbm [shape: f32[2,1024], index: 2, kind: output, shape index: {}]  }
   0x1   :  { %8 = vsyncpa [#allocation4], 0  ;;  %s107_s9 = smov [#allocation2]  }
   0x2   :  { %s17_s10 = sshll.u32 %s107_s9, 4  ;;  %s18_s10 = int_to_ptr.vmem [resolvable:$true] %s17_s10 }
   0x3   :  { %s71_s11 = scalar_lea.vmem %s18_s10, 256  ;;  %p76_p1 = scmp.lt.s32.totalorder %s18_s10, %s18_s10 }
   0x4   :  { %p72_p0 = scmp.ne.s32.totalorder %s18_s10, %s71_s11  ;;  %p77_p2 = scmp.lt.s32.totalorder %s71_s11, %s71_s11 }
   0x6   :  { %p78_p3 = por %p77_p2, %p76_p1 }
   0x8   :  { %p79_p4 = pnand %p78_p3, %p72_p0 }
   0xa   :  { %82 = shalt.err (!%p79_p4)
}
   0xb   :  { %20 = dma.hbm_to_vmem [thread:$0]  %s136_s1, 256, %s18_s10, [#allocation3]  }
   0xc   :  { %103 = dma.done.wait [#allocation3], 256  }
   0xd   :  { %104 = vsyncadd [#allocation3], 4294967040  ;;  %v108_v0 = vmov 0   ;;  %v26_v1 = vld [vmem:[%s135_s0] sm:$0x3]  ;;  %v34_v4 = vlaneseq  ;;  %v25_v10 = vld [vmem:[#allocation2 + $0x8] sm:$0xff] }
   0xe   :  { %62 = vset.pattern.permute.xlu0 %v108_v0  ;;  %v109_v2 = vmov 269488144   ;;  %v24_v9 = vld [vmem:[#allocation2] sm:$0xff]  ;;  %s110_s16 = smov [#allocation5]  }
   0xf   :  { %29 = vperm.xlu0 %62, %v26_v1   ;;  %v32_v3 = vunpack.c.l.s4 %v109_v2  ;;  %v35_v6 = vshrl.u32 %v34_v4, 7  ;;  %s49_s1 = sshll.u32 %s110_s16, 4  ;;  %s50_s1 = int_to_ptr.vmem [resolvable:$true] %s49_s1 }
  0x10   :  { %s83_s17 = scalar_lea.vmem %s50_s1, 256  ;;  %p88_p6 = scmp.lt.s32.totalorder %s50_s1, %s50_s1 }
  0x11   :  { %v33_v5 = vunpack.c.0.s8 %v32_v3  ;;  %p84_p5 = scmp.ne.s32.totalorder %s50_s1, %s83_s17  ;;  %p89_p7 = scmp.lt.s32.totalorder %s83_s17, %s83_s17 }
  0x13   :  { %v36_v7 = vsub.s32 %v33_v5, %v35_v6  ;;  %p90_p8 = por %p89_p7, %p88_p6 }
  0x15   :  { %p91_p9 = pnand %p90_p8, %p84_p5 }
  0x8a   :  { %v30_v8 = vpop.permute.xlu0 %29 }
  0x8b   :  { %v37_v11 = vrot.slane %v30_v8, %v36_v7 }
  0x8d   :  { %v39_v12 = vmul.f32 %v37_v11, %v24_v9  ;;  %v40_v13 = vmul.f32 %v37_v11, %v25_v10 }
  0x8f   :  { %41 = vst [vmem:[#allocation5] sm:$0xff] %v39_v12  ;;  %42 = vst [vmem:[#allocation5 + $0x8] sm:$0xff] %v40_v13 }
  0x90   :  { %94 = shalt.err (!%p91_p9)
}
  0x91   :  { %52 = dma.vmem_to_hbm [thread:$0]  %s50_s1, 256, %s137_s2, [#allocation4]  }
  0x92   :  { %105 = dma.done.wait [#allocation4], 256  }
  0x93   :  { %106 = vsyncadd [#allocation4], 4294967040 }
  0x94   :  { %56 = vsyncpa [#allocation3], 1 }
  0x95   :  { %57 = vsyncpa [#allocation4], 1 }

</bundles_post_ra>
